<compile_context>
chip_gen: v7x
topology: tpu7x:2x2x1
jax: 0.10.0
libtpu: 0.0.40
codegen_flags: <defaults>
</compile_context>

<pallas_src>
import functools
import math

import jax
import jax.numpy as jnp
from jax.experimental import pallas as pl
from jax.experimental.pallas import tpu as pltpu


# ---------------------------------------------------------------------------
# Kernel
# ---------------------------------------------------------------------------
def noise_project_kernel(xside_ref, bz_ref, wz_ref, wout_ref, bout_ref,
                         res_ref, skip_ref, *, cp, nonlin_dtype):
    # TODO(synk): forward_time (CustomMamba) and forward_feature
    # (SpatialLearning) are external submodules not defined in the reference
    # snippet; they are treated as identity here.
    xside = xside_ref[...]                                   # (Cp+Sp, TN) bf16

    # Fused mid_projection(x) + cond_projection(side) + folded per-batch bias.
    z = (jnp.dot(wz_ref[...], xside, preferred_element_type=jnp.float32)
         + bz_ref[...])                                      # (2Cp, TN) f32

    # Gated nonlinearity.  bf16 on v6e/v7x (bf16 VPU/EUP), f32 on v5e.
    zc = z.astype(nonlin_dtype)
    gate = zc[:cp, :]
    filt = zc[cp:, :]
    # sigmoid(g) == 0.5*(1 + tanh(g/2)) -> one EUP push per half.
    half = jnp.asarray(0.5, nonlin_dtype)
    one = jnp.asarray(1.0, nonlin_dtype)
    h = (half * (jnp.tanh(gate * half) + one)) * jnp.tanh(filt)   # (Cp, TN)

    # output_projection.
    out = (jnp.dot(wout_ref[...], h.astype(wout_ref.dtype),
                   preferred_element_type=jnp.float32)
           + bout_ref[...])                                  # (2Cp, TN) f32

    x = xside[:cp, :].astype(jnp.float32)                    # original x rows
    inv_sqrt2 = jnp.float32(1.0 / math.sqrt(2.0))
    res_ref[...] = ((x + out[:cp, :]) * inv_sqrt2).astype(res_ref.dtype)
    skip_ref[...] = out[cp:, :].astype(skip_ref.dtype)


# ---------------------------------------------------------------------------
# Wrapper helpers
# ---------------------------------------------------------------------------
def _round_up(v, m):
    return ((v + m - 1) // m) * m


def _vmem_capacity_bytes():
    try:
        return int(pltpu.get_tpu_info().vmem_capacity_bytes)
    except Exception:
        return 64 * 1024 * 1024          # conservative (v7x per-TC physical)


def _nonlin_compute_dtype():
    try:
        kind = jax.devices()[0].device_kind.lower()
    except Exception:
        return jnp.float32
    # No bf16 VPU/EUP before v6: keep the nonlinearity in f32 there.
    if any(v in kind for v in ("v2", "v3", "v4", "v5")):
        return jnp.float32
    return jnp.bfloat16


def _vmem_bytes(block_n, Cp, Sp, itemsize):
    act_in = 2 * (Cp + Sp) * block_n * itemsize          # xside, double-buffered
    act_out = 2 * 2 * Cp * block_n * itemsize            # res + skip, double-buffered
    interm = 2 * (2 * Cp) * block_n * 4                  # z / out f32 working set
    weights = 2 * ((2 * Cp) * (Cp + Sp) + (2 * Cp) * Cp) * itemsize
    bias = 2 * (2 * Cp) * 4 * 2
    return act_in + act_out + interm + weights + bias


def _pick_block_n(Np, B, Cp, Sp, itemsize, vmem_budget):
    """Largest multiple of 128 dividing Np that fits the VMEM budget, while
    trying to keep >= 4 total grid steps (2 per v7x TensorCore)."""
    cands = [m for m in range(128, Np + 1, 128) if Np % m == 0]
    fit = [m for m in cands if _vmem_bytes(m, Cp, Sp, itemsize) <= vmem_budget]
    if not fit:
        return 128
    block = max(fit)
    if B * (Np // block) < 4:
        need = -(-4 // B)                                 # ceil(4 / B)
        smaller = [m for m in fit if Np // m >= need]
        if smaller:
            block = max(smaller)
    return block


# ---------------------------------------------------------------------------
# Wrapper
# ---------------------------------------------------------------------------
def noise_project(x, side_info, diffusion_emb, params,
                  *, io_dtype=jnp.bfloat16, block_n=None):
    """x: (B, C, K, L), side_info: (B, S, K, L), diffusion_emb: (B, E)."""
    wdiff, bdiff, wcond, bcond, wmid, bmid, wout, bout = params
    B, C, K, L = x.shape
    N = K * L
    S = side_info.shape[1]

    itemsize = jnp.dtype(io_dtype).itemsize
    pack = 32 // itemsize                    # sublane pack: 16 for bf16, 8 for f32
    Cp = _round_up(C, pack)
    Sp = _round_up(S, pack)
    Np = _round_up(N, 128)

    # ---- Fold diffusion projection + stage-1 biases into one per-batch column
    d = diffusion_emb.astype(jnp.float32) @ wdiff.T + bdiff[:, 0]      # (B, C)
    bz = (bmid[:, 0] + bcond[:, 0])[None, :] + d @ wmid.T              # (B, 2C)

    bz_p = jnp.zeros((B, 2 * Cp, 1), jnp.float32)
    bz_p = bz_p.at[:, :C, 0].set(bz[:, :C]).at[:, Cp:Cp + C, 0].set(bz[:, C:])

    bout_p = jnp.zeros((2 * Cp, 1), jnp.float32)
    bout_p = bout_p.at[:C, 0].set(bout[:C, 0]).at[Cp:Cp + C, 0].set(bout[C:, 0])

    # ---- Fused stage-1 weight: columns [0:C] contract x, [Cp:Cp+S] contract
    #      side_info; gate rows at [0:C], filter rows at [Cp:Cp+C].
    wz_p = jnp.zeros((2 * Cp, Cp + Sp), jnp.float32)
    wz_p = wz_p.at[:C, :C].set(wmid[:C]).at[Cp:Cp + C, :C].set(wmid[C:])
    wz_p = wz_p.at[:C, Cp:Cp + S].set(wcond[:C]).at[Cp:Cp + C, Cp:Cp + S].set(wcond[C:])
    wz_p = wz_p.astype(io_dtype)

    wout_p = jnp.zeros((2 * Cp, Cp), jnp.float32)
    wout_p = wout_p.at[:C, :C].set(wout[:C]).at[Cp:Cp + C, :C].set(wout[C:])
    wout_p = wout_p.astype(io_dtype)

    # ---- Channel-stacked activations: one bf16 input stream, lane-padded N.
    xs = jnp.zeros((B, Cp + Sp, Np), io_dtype)
    xs = xs.at[:, :C, :N].set(x.reshape(B, C, N).astype(io_dtype))
    xs = xs.at[:, Cp:Cp + S, :N].set(side_info.reshape(B, S, N).astype(io_dtype))

    # ---- Tiling / VMEM accounting ----
    vmem_cap = _vmem_capacity_bytes()
    vmem_budget = min(int(vmem_cap * 0.4), 48 * 1024 * 1024)
    if block_n is None or Np % block_n != 0 or block_n % 128 != 0:
        block_n = _pick_block_n(Np, B, Cp, Sp, itemsize, vmem_budget)
    grid = (B, Np // block_n)

    vmem_limit = int(min(vmem_cap,
                         max(_vmem_bytes(block_n, Cp, Sp, itemsize) + (8 << 20),
                             32 << 20)))

    grid_spec = pltpu.PrefetchScalarGridSpec(
        num_scalar_prefetch=0,
        grid=grid,
        in_specs=[
            pl.BlockSpec((None, Cp + Sp, block_n), lambda b, n: (b, 0, n)),  # x|side
            pl.BlockSpec((None, 2 * Cp, 1), lambda b, n: (b, 0, 0)),         # folded bias
            pl.BlockSpec((2 * Cp, Cp + Sp), lambda b, n: (0, 0)),            # W_z (fused)
            pl.BlockSpec((2 * Cp, Cp), lambda b, n: (0, 0)),                 # W_out
            pl.BlockSpec((2 * Cp, 1), lambda b, n: (0, 0)),                  # b_out
        ],
        out_specs=[
            pl.BlockSpec((None, Cp, block_n), lambda b, n: (b, 0, n)),       # res
            pl.BlockSpec((None, Cp, block_n), lambda b, n: (b, 0, n)),       # skip
        ],
    )

    kernel = functools.partial(noise_project_kernel,
                               cp=Cp, nonlin_dtype=_nonlin_compute_dtype())

    res_p, skip_p = pl.pallas_call(
        kernel,
        out_shape=(jax.ShapeDtypeStruct((B, Cp, Np), io_dtype),
                   jax.ShapeDtypeStruct((B, Cp, Np), io_dtype)),
        grid_spec=grid_spec,
        compiler_params=pltpu.CompilerParams(
            dimension_semantics=("parallel", "parallel"),
            vmem_limit_bytes=vmem_limit),
    )(xs, bz_p, wz_p, wout_p, bout_p)

    res = res_p[:, :C, :N].reshape(B, C, K, L)
    skip = skip_p[:, :C, :N].reshape(B, C, K, L)
    return res, skip


# ---------------------------------------------------------------------------
# Pure-JAX reference (submodules = identity), f32
# ---------------------------------------------------------------------------
def reference(x, side_info, diffusion_emb, params):
    wdiff, bdiff, wcond, bcond, wmid, bmid, wout, bout = params
    B, C, K, L = x.shape
    N = K * L
    x2 = x.reshape(B, C, N)
    side2 = side_info.reshape(B, side_info.shape[1], N)

    d = diffusion_emb @ wdiff.T + bdiff[:, 0]                    # (B, C)
    y = x2 + d[:, :, None]
    mid = jnp.einsum('oc,bcn->bon', wmid, y) + bmid[None]
    cond = jnp.einsum('os,bsn->bon', wcond, side2) + bcond[None]
    z = mid + cond
    gate, filt = z[:, :C], z[:, C:]
    h = jax.nn.sigmoid(gate) * jnp.tanh(filt)
    out = jnp.einsum('oc,bcn->bon', wout, h) + bout[None]
    residual, skip = out[:, :C], out[:, C:]
    res = (x2 + residual) / math.sqrt(2.0)
    return res.reshape(B, C, K, L), skip.reshape(B, C, K, L)


def init_params(key, C, S, E):
    ks = jax.random.split(key, 8)
    scale = 0.1
    wdiff = scale * jax.random.normal(ks[0], (C, E), jnp.float32)
    bdiff = scale * jax.random.normal(ks[1], (C, 1), jnp.float32)
    wcond = scale * jax.random.normal(ks[2], (2 * C, S), jnp.float32)
    bcond = scale * jax.random.normal(ks[3], (2 * C, 1), jnp.float32)
    wmid = scale * jax.random.normal(ks[4], (2 * C, C), jnp.float32)
    bmid = scale * jax.random.normal(ks[5], (2 * C, 1), jnp.float32)
    wout = scale * jax.random.normal(ks[6], (2 * C, C), jnp.float32)
    bout = scale * jax.random.normal(ks[7], (2 * C, 1), jnp.float32)
    return (wdiff, bdiff, wcond, bcond, wmid, bmid, wout, bout)


if __name__ == "__main__":
    # Small shapes consistent with the module:
    #   B=2 batch, channels=8, K=16 nodes, L=8 time steps, side_dim=16,
    #   diffusion_embedding_dim=32. (K*L = 128 -> lane-dense.)
    B, C, K, L = 2, 8, 16, 8
    S, E = 16, 32

    key = jax.random.PRNGKey(0)
    kx, ks, kd, kp = jax.random.split(key, 4)
    x = jax.random.normal(kx, (B, C, K, L), jnp.float32)
    side_info = jax.random.normal(ks, (B, S, K, L), jnp.float32)
    diffusion_emb = jax.random.normal(kd, (B, E), jnp.float32)
    params = init_params(kp, C, S, E)

    res, skip = noise_project(x, side_info, diffusion_emb, params)
    jax.block_until_ready((res, skip))

    res_ref, skip_ref = reference(x, side_info, diffusion_emb, params)
    assert res.shape == (B, C, K, L) and skip.shape == (B, C, K, L)
    # bf16 HBM I/O -> compare in f32 with a bf16-appropriate tolerance.
    assert jnp.allclose(res.astype(jnp.float32), res_ref, atol=3e-2, rtol=3e-2)
    assert jnp.allclose(skip.astype(jnp.float32), skip_ref, atol=3e-2, rtol=3e-2)

    print("KERNEL_OK")
</pallas_src>

<mosaic_0001>
module attributes {stable_mosaic.version = 11 : i64} {
  func.func @noise_project_kernel(%arg0: i32, %arg1: i32, %arg2: memref<1x32x128xbf16, #tpu.memory_space<vmem>>, %arg3: memref<1x32x1xf32, #tpu.memory_space<vmem>>, %arg4: memref<32x32xbf16, #tpu.memory_space<vmem>>, %arg5: memref<32x16xbf16, #tpu.memory_space<vmem>>, %arg6: memref<32x1xf32, #tpu.memory_space<vmem>>, %arg7: memref<1x16x128xbf16, #tpu.memory_space<vmem>>, %arg8: memref<1x16x128xbf16, #tpu.memory_space<vmem>>) attributes {dimension_semantics = [#tpu.dimension_semantics<parallel>, #tpu.dimension_semantics<parallel>], iteration_bounds = array<i64: 2, 1>, scalar_prefetch = 0 : i64, scratch_operands = 0 : i64, tpu.core_type = #tpu.core_type<tc>, window_params = [{transform_indices = @transform_0, window_bounds = array<i64: 1, 32, 128>}, {transform_indices = @transform_1, window_bounds = array<i64: 1, 32, 1>}, {pipeline_mode = #tpu.pipeline_mode<synchronous>, transform_indices = @transform_2, window_bounds = array<i64: 32, 32>}, {pipeline_mode = #tpu.pipeline_mode<synchronous>, transform_indices = @transform_3, window_bounds = array<i64: 32, 16>}, {pipeline_mode = #tpu.pipeline_mode<synchronous>, transform_indices = @transform_4, window_bounds = array<i64: 32, 1>}, {transform_indices = @transform_5, window_bounds = array<i64: 1, 16, 128>}, {transform_indices = @transform_6, window_bounds = array<i64: 1, 16, 128>}]} {
    %c0 = arith.constant 0 : index
    %c0_0 = arith.constant 0 : index
    %c0_1 = arith.constant 0 : index
    %0 = vector.load %arg2[%c0, %c0_0, %c0_1] : memref<1x32x128xbf16, #tpu.memory_space<vmem>>, vector<1x32x128xbf16>
    %1 = vector.shape_cast %0 : vector<1x32x128xbf16> to vector<32x128xbf16>
    %c0_2 = arith.constant 0 : index
    %c0_3 = arith.constant 0 : index
    %2 = vector.load %arg4[%c0_2, %c0_3] : memref<32x32xbf16, #tpu.memory_space<vmem>>, vector<32x32xbf16>
    %cst = arith.constant dense<0.000000e+00> : vector<32x128xf32>
    %3 = tpu.matmul %2, %1, %cst {dimension_numbers = #tpu.dot_dimension_numbers<[1], [0], [0], [1], [0, 0, 1, 1], [], []>} : vector<32x32xbf16>, vector<32x128xbf16>, vector<32x128xf32> -> vector<32x128xf32>
    %c0_4 = arith.constant 0 : index
    %c0_5 = arith.constant 0 : index
    %c0_6 = arith.constant 0 : index
    %4 = vector.load %arg3[%c0_4, %c0_5, %c0_6] : memref<1x32x1xf32, #tpu.memory_space<vmem>>, vector<1x32x1xf32>
    %5 = vector.shape_cast %4 : vector<1x32x1xf32> to vector<32x1xf32>
    %6 = vector.broadcast %5 : vector<32x1xf32> to vector<32x128xf32>
    %7 = arith.addf %3, %6 : vector<32x128xf32>
    %8 = arith.truncf %7 : vector<32x128xf32> to vector<32x128xbf16>
    %9 = vector.extract_strided_slice %8 {offsets = [0, 0], sizes = [16, 128], strides = [1, 1]} : vector<32x128xbf16> to vector<16x128xbf16>
    %10 = vector.extract_strided_slice %8 {offsets = [16, 0], sizes = [16, 128], strides = [1, 1]} : vector<32x128xbf16> to vector<16x128xbf16>
    %cst_7 = arith.constant 5.000000e-01 : bf16
    %11 = vector.broadcast %cst_7 : bf16 to vector<16x128xbf16>
    %12 = arith.mulf %9, %11 : vector<16x128xbf16>
    %13 = math.tanh %12 : vector<16x128xbf16>
    %cst_8 = arith.constant 1.000000e+00 : bf16
    %14 = vector.broadcast %cst_8 : bf16 to vector<16x128xbf16>
    %15 = arith.addf %13, %14 : vector<16x128xbf16>
    %cst_9 = arith.constant 5.000000e-01 : bf16
    %16 = vector.broadcast %cst_9 : bf16 to vector<16x128xbf16>
    %17 = arith.mulf %16, %15 : vector<16x128xbf16>
    %18 = math.tanh %10 : vector<16x128xbf16>
    %19 = arith.mulf %17, %18 : vector<16x128xbf16>
    %c0_10 = arith.constant 0 : index
    %c0_11 = arith.constant 0 : index
    %20 = vector.load %arg5[%c0_10, %c0_11] : memref<32x16xbf16, #tpu.memory_space<vmem>>, vector<32x16xbf16>
    %cst_12 = arith.constant dense<0.000000e+00> : vector<32x128xf32>
    %21 = tpu.matmul %20, %19, %cst_12 {dimension_numbers = #tpu.dot_dimension_numbers<[1], [0], [0], [1], [0, 0, 1, 1], [], []>} : vector<32x16xbf16>, vector<16x128xbf16>, vector<32x128xf32> -> vector<32x128xf32>
    %c0_13 = arith.constant 0 : index
    %c0_14 = arith.constant 0 : index
    %22 = vector.load %arg6[%c0_13, %c0_14] : memref<32x1xf32, #tpu.memory_space<vmem>>, vector<32x1xf32>
    %23 = vector.broadcast %22 : vector<32x1xf32> to vector<32x128xf32>
    %24 = arith.addf %21, %23 : vector<32x128xf32>
    %25 = vector.extract_strided_slice %1 {offsets = [0, 0], sizes = [16, 128], strides = [1, 1]} : vector<32x128xbf16> to vector<16x128xbf16>
    %26 = arith.extf %25 : vector<16x128xbf16> to vector<16x128xf32>
    %27 = vector.extract_strided_slice %24 {offsets = [0, 0], sizes = [16, 128], strides = [1, 1]} : vector<32x128xf32> to vector<16x128xf32>
    %28 = arith.addf %26, %27 : vector<16x128xf32>
    %cst_15 = arith.constant 0.707106769 : f32
    %29 = vector.broadcast %cst_15 : f32 to vector<16x128xf32>
    %30 = arith.mulf %28, %29 : vector<16x128xf32>
    %31 = arith.truncf %30 : vector<16x128xf32> to vector<16x128xbf16>
    %c0_16 = arith.constant 0 : index
    %c0_17 = arith.constant 0 : index
    %c0_18 = arith.constant 0 : index
    %32 = vector.load %arg7[%c0_16, %c0_17, %c0_18] : memref<1x16x128xbf16, #tpu.memory_space<vmem>>, vector<1x16x128xbf16>
    %33 = vector.shape_cast %32 : vector<1x16x128xbf16> to vector<16x128xbf16>
    %34 = vector.shape_cast %31 : vector<16x128xbf16> to vector<1x16x128xbf16>
    tpu.vector_store %arg7[%c0_16, %c0_17, %c0_18], %34 {strides = array<i32>} : memref<1x16x128xbf16, #tpu.memory_space<vmem>>, vector<1x16x128xbf16>,
    %35 = vector.extract_strided_slice %24 {offsets = [16, 0], sizes = [16, 128], strides = [1, 1]} : vector<32x128xf32> to vector<16x128xf32>
    %36 = arith.truncf %35 : vector<16x128xf32> to vector<16x128xbf16>
    %c0_19 = arith.constant 0 : index
    %c0_20 = arith.constant 0 : index
    %c0_21 = arith.constant 0 : index
    %37 = vector.load %arg8[%c0_19, %c0_20, %c0_21] : memref<1x16x128xbf16, #tpu.memory_space<vmem>>, vector<1x16x128xbf16>
    %38 = vector.shape_cast %37 : vector<1x16x128xbf16> to vector<16x128xbf16>
    %39 = vector.shape_cast %36 : vector<16x128xbf16> to vector<1x16x128xbf16>
    tpu.vector_store %arg8[%c0_19, %c0_20, %c0_21], %39 {strides = array<i32>} : memref<1x16x128xbf16, #tpu.memory_space<vmem>>, vector<1x16x128xbf16>,
    return
  }
  func.func @transform_0(%arg0: i32, %arg1: i32) -> (i32, i32, i32) {
    %c0_i32 = arith.constant 0 : i32
    %c0_i32_0 = arith.constant 0 : i32
    return %arg0, %c0_i32, %arg1 : i32, i32, i32
  }
  func.func @transform_1(%arg0: i32, %arg1: i32) -> (i32, i32, i32) {
    %c0_i32 = arith.constant 0 : i32
    %c0_i32_0 = arith.constant 0 : i32
    %c0_i32_1 = arith.constant 0 : i32
    return %arg0, %c0_i32, %c0_i32_0 : i32, i32, i32
  }
  func.func @transform_2(%arg0: i32, %arg1: i32) -> (i32, i32) {
    %c0_i32 = arith.constant 0 : i32
    %c0_i32_0 = arith.constant 0 : i32
    %c0_i32_1 = arith.constant 0 : i32
    return %c0_i32, %c0_i32_0 : i32, i32
  }
  func.func @transform_3(%arg0: i32, %arg1: i32) -> (i32, i32) {
    %c0_i32 = arith.constant 0 : i32
    %c0_i32_0 = arith.constant 0 : i32
    %c0_i32_1 = arith.constant 0 : i32
    return %c0_i32, %c0_i32_0 : i32, i32
  }
  func.func @transform_4(%arg0: i32, %arg1: i32) -> (i32, i32) {
    %c0_i32 = arith.constant 0 : i32
    %c0_i32_0 = arith.constant 0 : i32
    %c0_i32_1 = arith.constant 0 : i32
    return %c0_i32, %c0_i32_0 : i32, i32
  }
  func.func @transform_5(%arg0: i32, %arg1: i32) -> (i32, i32, i32) {
    %c0_i32 = arith.constant 0 : i32
    %c0_i32_0 = arith.constant 0 : i32
    return %arg0, %c0_i32, %arg1 : i32, i32, i32
  }
  func.func @transform_6(%arg0: i32, %arg1: i32) -> (i32, i32, i32) {
    %c0_i32 = arith.constant 0 : i32
    %c0_i32_0 = arith.constant 0 : i32
    return %arg0, %c0_i32, %arg1 : i32, i32, i32
  }
}

</mosaic_0001>

<bundles_post_ra>
// kernel: tpu_custom_call.1
= control target key start
LH: loop header
LB: loop body
LE: loop exit
PB: predicated region body
PF: predicated region fallthrough
CT: control target
= control target key end

     0   :  { %12 = vsyncpa [#allocation3], 0  ;;  %s1212_s0 = inlined_call_operand.vmem [shape: bf16[2,32,128], index: 0, kind: input, shape index: {}]   ;;  %s1213_s1 = inlined_call_operand.vmem [shape: f32[2,32,1], index: 1, kind: input, shape index: {}]   ;;  %s1214_s2 = inlined_call_operand.vmem [shape: bf16[32,32], index: 2, kind: input, shape index: {}]   ;;  %s1215_s3 = inlined_call_operand.vmem [shape: bf16[32,16], index: 3, kind: input, shape index: {}]   ;;  %s1216_s4 = inlined_call_operand.vmem [shape: f32[32,1], index: 4, kind: input, shape index: {}]   ;;  %s1217_s5 = inlined_call_operand.hbm [shape: bf16[2,16,128], index: 5, kind: output, shape index: {0}]   ;;  %s1218_s6 = inlined_call_operand.hbm [shape: bf16[2,16,128], index: 6, kind: output, shape index: {1}]  }
   0x1   :  { %14 = vsyncpa [#allocation3 + $0x1], 0 }
   0x2   :  { %15 = vsyncpa [#allocation5], 0 }
   0x3   :  { %17 = vsyncpa [#allocation5 + $0x1], 0  ;;  %s1010_s21 = smov 0   ;;  %s1012_s22 = smov 0  }
   0x4   :  { %s1014_s23 = smov 0   ;;  %s1016_s24 = smov 0  }
   0x5   :  { %s1018_s25 = smov 0   ;;  %s1020_s26 = smov 0  }
   0x6 LB: > { %s710_s27 = sadd.s32 4294967295, %s968_s26   ;;  %s711_s28 = sadd.s32 4294967294, %s968_s26   ;;  %s968_s26 = sphi %s1020_s26, %s23_s26   ;;  %s964_s25 = sphi %s1018_s25, %s1226_s25   ;;  %s960_s24 = sphi %s1016_s24, %s1225_s24   ;;  %s956_s23 = sphi %s1014_s23, %s1224_s23   ;;  %s952_s22 = sphi %s1012_s22, %s1223_s22   ;;  %s948_s21 = sphi %s1010_s21, %s1222_s21  }
   0x7   : > { %s35_s29 = sadd.s32 1, %s964_s25  ;;  %s161_s30 = sadd.s32 1, %s956_s23 }
   0x8   : > { %p37_p0 = scmp.ge.s32.totalorder %s35_s29, 2  ;;  %p171_p1 = scmp.ne.s32.totalorder %s956_s23, %s952_s22 }
   0x9   : > { %p172_p2 = scmp.eq.s32.totalorder %s710_s27, 1  ;;  %p177_p3 = scmp.ne.s32.totalorder %s952_s22, %s948_s21 }
   0xa   : > { %s1228_s29 = smov (%p37_p0, %s35_s29), 0  ;;  %p178_p5 = scmp.eq.s32.totalorder %s711_s28, 1 }
   0xb   : > { %p1050_p4 = por %p172_p2, %p171_p1  ;;  %s156_s8 = ssub.s32 %s964_s25, %s1228_s29 }
   0xc   : > { %p714_p6 = scmp.ge.s32.totalorder %s968_s26, 1  ;;  %p159_p7 = scmp.eq.s32.totalorder %s156_s8, 0 }
   0xd   : > { %p1057_p8 = por %p178_p5, %p177_p3  ;;  %p252_p9 = scmp.lt.s32.totalorder %s968_s26, 3 }
   0xe   : > { %s1063_s10 = scalar_select %p159_p7, %s956_s23, %s161_s30  }
   0xf   : > { %p253_p10 = pnand %p714_p6, %p252_p9 }
  0x10   : > { %p295_p11 = scmp.lt.s32.totalorder (!%p253_p10), %s960_s24, 1  ;;  %v849_v0 = vld [vmem:[%s1214_s2] sm:$0xff] (!%p253_p10)   ;;  %vm365_vm0 = vcmask (!%p253_p10), 261120   ;;  %v970_v1 = vmov (!%p253_p10), 0   ;;  %v850_v8 = vld [vmem:[%s1214_s2 + $0x8] sm:$0xff] (!%p253_p10)   ;;  %v435_v11 = vld [vmem:[%s1216_s4 + $0x10] sm:$0xff] (!%p253_p10) }
  0x11   : > { %256 = sbr.rel (%p253_p10) target bundleno = 538 (0x21a), region = 40  ;;  %772 = vmatprep.mubr.msk.bf16.mxu0 (!%p253_p10), %vm365_vm0, %v849_v0  ;;  %845 = vset.pattern.permute.xlu0 (!%p253_p10), %v970_v1  ;;  %v433_v9 = vld [vmem:[%s1216_s4] sm:$0xff] (!%p253_p10)  ;;  %v434_v10 = vld [vmem:[%s1216_s4 + $0x8] sm:$0xff] (!%p253_p10)  ;;  %v436_v12 = vld [vmem:[%s1216_s4 + $0x18] sm:$0xff] (!%p253_p10)  ;;  %vm467_vm1 = vcmask (!%p253_p10), 130048   ;;  %s1106_s28 = sand.u32 (!%p253_p10), 1, %s952_s22  }
  0x12   : > { %846 = vset.pattern.permute.xlu1 (!%p253_p10), %v970_v1  ;;  %v851_v13 = vld [vmem:[%s1215_s3] sm:$0xff] (!%p253_p10)   ;;  %v852_v34 = vld [vmem:[%s1215_s3 + $0x8] sm:$0xff] (!%p253_p10)   ;;  %s715_s30 = sshll.u32 (!%p253_p10), %s1106_s28, 3  ;;  %s749_s12 = sshll.u32 (!%p253_p10), %s960_s24, 7 }
  0x13   : > { %778 = vmatprep.mubr.msk.bf16.mxu1 (!%p253_p10), %vm467_vm1, %v851_v13  ;;  %s294_s8 = scalar_lea.vmem (!%p253_p10), [#allocation4], %s715_s30  ;;  %s1121_s16 = scalar_lea.vmem (!%p253_p10), [#allocation2], %s715_s30 }
  0x14   : > { %s586_s11 = sshll.u32 (!%p253_p10), %s294_s8, 4  ;;  %s971_s20 = smov (!%p253_p10), [#allocation4]   ;;  %s1112_s11 = int_to_ptr.vmem [resolvable:$true] %s586_s11 }
  0x15   : > { %s858_s19 = scalar_lea.vmem (!%p253_p10), %s1112_s11, 128 }
  0x16   : > { %p859_p12 = scmp.ne.s32.totalorder (!%p253_p10), %s1112_s11, %s858_s19 }
  0x18   : > { %s296_s13 = scalar_select %p295_p11, %s960_s24, 1 }
  0x19   : > { %p860_p13 = pnand %p859_p12, %p1050_p4 }
  0x1a   : > { %s743_s14 = sshll.u32 %s296_s13, 4  ;;  %s744_s15 = sshll.u32 %s296_s13, 5 }
  0x1b   : > { %s302_s18 = scalar_lea.vmem %s1212_s0, %s743_s14  ;;  %s307_s27 = scalar_lea.vmem %s1213_s1, %s744_s15 }
  0x1c   : > { %v1077_v2 = vld [vmem:[%s302_s18] sm:$0xff]   ;;  %v848_v3 = vld [vmem:[%s302_s18 + $0x8] sm:$0xff]   ;;  %v321_v5 = vld [vmem:[%s307_s27 + $0x10] sm:$0xff]  ;;  %s1119_s15 = scalar_lea.hbm %s1218_s6, %s749_s12  ;;  %s555_s18 = scalar_lea.sflag [#allocation5], %s1106_s28 }
  0x1d   : > { %v319_v4 = vld [vmem:[%s307_s27] sm:$0xff]  ;;  %768 = vmatprep.subr.bf16.mxu0 %v1077_v2  ;;  %v320_v6 = vld [vmem:[%s307_s27 + $0x8] sm:$0xff]  ;;  %335 = vperm.xlu1 %846, %v321_v5   ;;  %v322_v7 = vld [vmem:[%s307_s27 + $0x18] sm:$0xff]  ;;  %v523_v37 = vunpack.c.l.bf16 %v1077_v2  ;;  %v524_v41 = vunpack.c.h.bf16 %v1077_v2  ;;  %p861_p0 = pneg %p860_p13  ;;  %s862_s27 = sshll.u32 %s971_s20, 4  ;;  %s863_s27 = int_to_ptr.vmem [resolvable:$false] %s862_s27 }
  0x1e   : > { %325 = vperm.xlu0 %845, %v319_v4   ;;  %769 = vmatpush3.bf16.msra.mxu0 %v1077_v2  ;;  %s864_s13 = scalar_lea.vmem %s863_s27, 256  ;;  %p865_p1 = scmp.lt.s32.totalorder %s1112_s11, %s863_s27 }
  0x1f   : > { %770 = vmatprep.subr.bf16.mxu0 %v848_v3  ;;  %p866_p2 = scmp.lt.s32.totalorder %s864_s13, %s858_s19 }
  0x21   : > { %340 = vperm.xlu1 %846, %v322_v7   ;;  %p867_p3 = por %p866_p2, %p865_p1 }
  0x22   : > { %330 = vperm.xlu0 %845, %v320_v6   ;;  %771 = vmatpush3.bf16.msra.mxu0 %v848_v3 }
  0x23   : > { %p868_p5 = pnand %p867_p3, %p861_p0 }
  0x25   : > { %773 = vmatmul.mubr.msk.bf16.vlgmr.msra.gmra.mrb[0].mxu0 %vm365_vm0, %v850_v8  ;;  %444 = vperm.xlu1 %846, %v434_v10  }
  0x26   : > { %439 = vperm.xlu0 %845, %v433_v9  }
  0x29   : > { %454 = vperm.xlu1 %846, %v436_v12  }
  0x2a   : > { %449 = vperm.xlu0 %845, %v435_v11  }
  0x9c   : > { %v336_v14 = vpop.permute.xlu1 %335 }
  0x9d   : > { %v326_v15 = vpop.permute.xlu0 %325 }
  0xa0   : > { %v341_v18 = vpop.permute.xlu1 %340 }
  0xa1   : > { %v331_v20 = vpop.permute.xlu0 %330 }
  0xa4   : > { %v445_v36 = vpop.permute.xlu1 %444 }
  0xa5   : > { %v440_v35 = vpop.permute.xlu0 %439 }
  0xa8   : > { %v455_v42 = vpop.permute.xlu1 %454 }
  0xa9   : > { %v450_v39 = vpop.permute.xlu0 %449 }
  0xf8   : > { %v774_v16 = vpop.f32.mrb[0].mxu0 }
  0xf9   : > { %v406_v17 = vpop.f32.mrb[1].mxu0  ;;  %v415_v21 = vadd.f32 %v774_v16, %v336_v14 }
  0xfa   : > { %v775_v19 = vpop.f32.mrb[2].mxu0  ;;  %v407_v24 = vadd.f32 %v406_v17, %v326_v15 }
  0xfb   : > { %v418_v22 = vadd.f32 %v775_v19, %v341_v18  ;;  %v409_v23 = vpop.f32.mrb[3].mxu0 }
  0xfc   : > { %v410_v25 = vadd.f32 %v409_v23, %v331_v20 }
  0xfd   : > { %v422_v26 = vpack.c.bf16 %v418_v22, %v415_v21 }
  0xfe   : > { %v421_v27 = vpack.c.bf16 %v410_v25, %v407_v24 }
 0x100   : > { %v423_v28 = vmul.bf16 1056980736, %v421_v27 }
 0x102   : > { %854 = vtanh.bf16 %v423_v28 }
 0x103   : > { %856 = vtanh.bf16 %v422_v26 }
 0x10d   : > { %v855_v29 = vpop.eup %854 }
 0x10e   : > { %v425_v30 = vadd.bf16 1065369472, %v855_v29  ;;  %v857_v32 = vpop.eup %856 }
 0x110   : > { %v426_v31 = vmul.bf16 1056980736, %v425_v30 }
 0x112   : > { %v428_v33 = vmul.bf16 %v857_v32, %v426_v31 }
 0x114   : > { %776 = vmatprep.subr.bf16.mxu1 %v428_v33 }
 0x115   : > { %777 = vmatpush3.bf16.msra.mxu1 %v428_v33 }
 0x118   : > { %779 = vmatmul.mubr.msk.bf16.vlgmr.msra.gmra.mrb[0].mxu1 %vm467_vm1, %v852_v34 }
 0x1eb   : > { %v780_v38 = vpop.f32.mrb[0].mxu1 }
 0x1ec   : > { %v508_v40 = vpop.f32.mrb[1].mxu1  ;;  %v517_v45 = vadd.f32 %v780_v38, %v450_v39 }
 0x1ed   : > { %v509_v43 = vadd.f32 %v508_v40, %v440_v35  ;;  %v781_v44 = vpop.f32.mrb[2].mxu1 }
 0x1ee   : > { %v520_v46 = vadd.f32 %v781_v44, %v455_v42  ;;  %v511_v47 = vpop.f32.mrb[3].mxu1 }
 0x1ef   : > { %v525_v48 = vadd.f32 %v523_v37, %v509_v43  ;;  %v512_v49 = vadd.f32 %v511_v47, %v445_v36 }
 0x1f0   : > { %v759_v50 = vpack.c.bf16 %v520_v46, %v517_v45 }
 0x1f1   : > { %v526_v51 = vadd.f32 %v524_v41, %v512_v49  ;;  %v527_v52 = vmul.f32 0.70710677, %v525_v48 }
 0x1f2   : > { %760 = vst [vmem:[%s294_s8] sm:$0xff] %v759_v50  }
 0x1f3   : > { %v528_v53 = vmul.f32 0.70710677, %v526_v51 }
 0x1f4   : > { %871 = shalt.err (!%p868_p5)
}
 0x1f5   : > { %s872_s30 = scalar_lea.hbm %s1119_s15, 128  ;;  %s876_s20 = scalar_lea.hbm %s1218_s6, 256 }
 0x1f6   : > { %p873_p6 = scmp.ne.s32.totalorder %s1119_s15, %s872_s30  ;;  %p877_p10 = scmp.lt.u32.totalorder %s1119_s15, %s1218_s6 }
 0x1f7   : > { %p878_p11 = scmp.lt.u32.totalorder %s876_s20, %s872_s30  ;;  %p880_p13 = scmp.lt.u32.totalorder %s872_s30, %s1119_s15 }
 0x1f8   : > { %p874_p7 = pnand %p873_p6, %p1050_p4 }
 0x1f9   : > { %p879_p12 = por %p878_p11, %p877_p10 }
 0x1fa   : > { %p875_p9 = pneg %p874_p7 }
 0x1fb   : > { %p881_p0 = por %p880_p13, %p879_p12 }
 0x1fd   : > { %p882_p1 = pnand %p881_p0, %p875_p9 }
 0x1ff   : > { %885 = shalt.err (!%p882_p1)
}
 0x200   : > { %s972_s19 = smov 64   ;;  %s973_s13 = smov 4   ;;  %v754_v54 = vpack.c.bf16 %v528_v53, %v527_v52 }
 0x201   : > { %783 = dma.vmem_to_hbm [thread:$0]  (%p1050_p4), %s1112_s11, 128, %s1119_s15, %s555_s18, %s972_s19, %s972_s19, %s973_s13  }
 0x202   : > { %s1156_s8 = scalar_lea.hbm %s1217_s5, %s749_s12  ;;  %s1221_s14 = sshll.u32 %s1121_s16, 4  ;;  %755 = vst [vmem:[%s1121_s16] sm:$0xff] %v754_v54   ;;  %s1160_s14 = int_to_ptr.vmem [resolvable:$true] %s1221_s14 }
 0x203   : > { %s550_s20 = scalar_lea.sflag [#allocation3], %s1106_s28  ;;  %s886_s27 = scalar_lea.vmem %s1160_s14, 128 }
 0x204   : > { %p887_p2 = scmp.ne.s32.totalorder %s1160_s14, %s886_s27  ;;  %s974_s11 = smov [#allocation2]  }
 0x205   : > { %s890_s24 = sshll.u32 %s974_s11, 4  ;;  %s891_s24 = int_to_ptr.vmem [resolvable:$false] %s890_s24 }
 0x206   : > { %p888_p3 = pnand %p887_p2, %p1050_p4  ;;  %s892_s15 = scalar_lea.vmem %s891_s24, 256 }
 0x207   : > { %p893_p6 = scmp.lt.s32.totalorder %s1160_s14, %s891_s24  ;;  %p894_p7 = scmp.lt.s32.totalorder %s892_s15, %s886_s27 }
 0x208   : > { %p889_p5 = pneg %p888_p3 }
 0x209   : > { %p895_p9 = por %p894_p7, %p893_p6 }
 0x20b   : > { %p896_p10 = pnand %p895_p9, %p889_p5 }
 0x20d   : > { %899 = shalt.err (!%p896_p10)
}
 0x20e   : > { %s900_s12 = scalar_lea.hbm %s1156_s8, 128  ;;  %s904_s17 = scalar_lea.hbm %s1217_s5, 256 }
 0x20f   : > { %p901_p11 = scmp.ne.s32.totalorder %s1156_s8, %s900_s12  ;;  %p905_p0 = scmp.lt.u32.totalorder %s1156_s8, %s1217_s5 }
 0x210   : > { %p906_p1 = scmp.lt.u32.totalorder %s904_s17, %s900_s12  ;;  %p908_p3 = scmp.lt.u32.totalorder %s900_s12, %s1156_s8 }
 0x211   : > { %p902_p12 = pnand %p901_p11, %p1050_p4 }
 0x212   : > { %p907_p2 = por %p906_p1, %p905_p0 }
 0x213   : > { %p903_p13 = pneg %p902_p12 }
 0x214   : > { %p909_p5 = por %p908_p3, %p907_p2 }
 0x216   : > { %p910_p6 = pnand %p909_p5, %p903_p13 }
 0x218   : > { %913 = shalt.err (!%p910_p6)
}
 0x219   : > { %782 = dma.vmem_to_hbm [thread:$0]  (%p1050_p4), %s1160_s14, 128, %s1156_s8, %s550_s20, %s972_s19, %s972_s19, %s973_s13  }
 0x21a PF: > { %p793_p7 = scmp.ge.s32.totalorder %s968_s26, 2  ;;  %s601_s27 = sand.u32 1, %s948_s21  }
 0x21b   : > { %s602_s24 = scalar_lea.sflag [#allocation3], %s601_s27 }
 0x21c   : > { %p787_p9 = pnand %p793_p7, %p1057_p8 }
 0x21e   : > { %939 = dma.done.wait (!%p787_p9), %s602_s24, 128  }
 0x21f   : > { %941 = vsyncadd (!%p787_p9), %s602_s24, 4294967168  ;;  %s611_s7 = scalar_lea.sflag [#allocation5], %s601_s27 }
 0x220   : > { %943 = dma.done.wait (!%p787_p9), %s611_s7, 128  }
 0x221   : > { %945 = vsyncadd (!%p787_p9), %s611_s7, 4294967168  ;;  %s23_s26 = sadd.s32 1, %s968_s26   ;;  %s1222_s21 = smov %s952_s22 }
 0x222   : > { %p20_p10 = scmp.ge.s32.totalorder %s23_s26, 4   ;;  %s1223_s22 = smov %s956_s23 }
 0x223   : > { %s1224_s23 = smov %s1063_s10  ;;  %s1225_s24 = smov %s964_s25 }
 0x224   : > { %s1226_s25 = smov %s1228_s29  ;;  %22 = sbr.rel (!%p20_p10) target bundleno = 6 (0x6), region = 95 }
 0x22b   :  { %616 = vsyncpa [#allocation3], 1 }
 0x22c   :  { %618 = vsyncpa [#allocation3 + $0x1], 1 }
 0x22d   :  { %619 = vsyncpa [#allocation5], 1 }
 0x22e   :  { %621 = vsyncpa [#allocation5 + $0x1], 1 }

</bundles_post_ra>
